<compile_context>
chip_gen: v7x
topology: tpu7x:2x2x1
jax: 0.10.0
libtpu: 0.0.40
codegen_flags: <defaults>
</compile_context>

<pallas_src>
import jax
import jax.numpy as jnp
from jax.experimental import pallas as pl
from jax.experimental.pallas import tpu as pltpu

LN_EPS = 1e-6


def _round_up(x, m):
    return ((x + m - 1) // m) * m


def _final_norm_proj_kernel(x_ref, scale_ref, w2_ref, b2_ref, o_ref):
    # x_ref:     (TS, D)   tile of hidden states for the current batch element
    # scale_ref: (1, D)    adaptive scale (emb) for this batch element, f32
    # w2_ref:    (D, OP)   Linear2 weight, bf16, zero-padded to OP (mult. of 128)
    # b2_ref:    (1, OP)   Linear2 bias, f32, zero-padded
    # o_ref:     (TS, OP)  projected output tile, bf16
    x32 = x_ref[...].astype(jnp.float32)                        # (TS, D)
    inv_d = jnp.float32(1.0 / x32.shape[-1])

    # Two-pass (centered) LayerNorm statistics in f32: immune to the
    # E[x^2] - mean^2 cancellation on un-normalized residual streams.
    mean = jnp.sum(x32, axis=-1, keepdims=True) * inv_d         # (TS, 1)
    xc = x32 - mean                                             # (TS, D) f32
    var = jnp.sum(xc * xc, axis=-1, keepdims=True) * inv_d      # (TS, 1)
    inv = jax.lax.rsqrt(var + LN_EPS)                           # (TS, 1)

    # Adaptive modulation: (1 + scale) is a cheap per-lane (1, D) op; the
    # full-tile modulation multiply runs in bf16 (packed VPU) before the MXU.
    s = (1.0 + scale_ref[...].astype(jnp.float32)).astype(jnp.bfloat16)  # (1, D)
    y = (xc * inv).astype(jnp.bfloat16) * s                     # (TS, D) bf16

    # MXU matmul in bf16, f32 accumulation, f32 bias, bf16 store.
    out = jnp.dot(y, w2_ref[...], preferred_element_type=jnp.float32)   # (TS, OP)
    out = out + b2_ref[...].astype(jnp.float32)
    o_ref[...] = out.astype(o_ref.dtype)


def prepare_final_layer_params(params):
    """One-time parameter prep: bf16 + lane-padded Linear2 weight/bias."""
    w2 = params["w2"]
    b2 = params["b2"]
    O = w2.shape[1]
    OP = _round_up(max(O, 128), 128)           # lane-dense output width
    return {
        "w1": params["w1"],
        "b1": params["b1"],
        "w2p": jnp.pad(w2.astype(jnp.bfloat16), ((0, 0), (0, OP - O))),
        "b2p": jnp.pad(b2.astype(jnp.float32), (0, OP - O))[None, :],   # (1, OP)
        "out_dim": O,
    }


def final_norm_proj(hidden_states, scale, w2p, b2p, *, seq_tile=1024,
                    vmem_budget=28 << 20):
    """hidden_states: (B,S,D), scale: (B,1,D) f32, w2p: (D,OP) bf16, b2p: (1,OP) f32.

    Returns the lane-padded projection (B, S, OP) in bf16; the caller slices
    [..., :O] (fused into the per-sample token gather)."""
    B, S, D = hidden_states.shape
    OP = w2p.shape[1]
    in_bytes = jnp.dtype(hidden_states.dtype).itemsize

    # Pick the largest sequence tile whose double-buffered footprint fits the
    # budget (safe across v5e/v6e/v7x scoped-VMEM defaults). Sublane-packed
    # dtypes (bf16) get 16-row alignment, f32 gets 8.
    align = 16 if in_bytes < 4 else 8

    def footprint(ts):
        return (2 * ts * D * in_bytes          # x tiles (double-buffered)
                + 2 * ts * OP * 2              # bf16 out tiles (double-buffered)
                + 2 * D * OP * 2               # resident bf16 weight
                + 2 * OP * 4 + 2 * D * 4)      # bias / scale rows

    TS = min(seq_tile, _round_up(S, align))
    while TS > align and footprint(TS) > vmem_budget:
        TS = _round_up(max(align, TS // 2), align)

    # No wrapper-side padding of S: ragged last tile handled by block bounds.
    grid = (B, pl.cdiv(S, TS))

    out = pl.pallas_call(
        _final_norm_proj_kernel,
        out_shape=jax.ShapeDtypeStruct((B, S, OP), jnp.bfloat16),
        grid=grid,
        in_specs=[
            # Streamed hidden-state tiles (leading batch dim squeezed away).
            pl.BlockSpec((None, TS, D), lambda b, s: (b, s, 0)),
            pl.BlockSpec((None, 1, D), lambda b, s: (b, 0, 0)),
            # VMEM-resident weight/bias (constant index map -> no re-DMA).
            # NOTE: if pushing TS to the VMEM limit, single-buffer these via
            # pipeline_mode=pl.Buffered(1) to free the second weight buffer.
            pl.BlockSpec((D, OP), lambda b, s: (0, 0)),
            pl.BlockSpec((1, OP), lambda b, s: (0, 0)),
        ],
        out_specs=pl.BlockSpec((None, TS, OP), lambda b, s: (b, s, 0)),
        compiler_params=pltpu.CompilerParams(
            dimension_semantics=("parallel", "parallel"),
            vmem_limit_bytes=max(int(footprint(TS)) + (4 << 20), 16 << 20)),
    )(hidden_states, scale, w2p, b2p)
    return out


def unpatchify_one(tokens, h, w, p, c):
    # tokens: (h*w, p*p*c) -> (c, h*p, w*p)   ['(h w) (p1 p2 c) -> c (h p1) (w p2)']
    x = tokens.reshape(h, w, p, p, c)
    x = jnp.transpose(x, (4, 0, 2, 1, 3))   # c, h, p1, w, p2
    return x.reshape(c, h * p, w * p)


def final_layer_forward(hidden_states, temb, prepared, img_sizes,
                        l_effective_img_len, seq_lengths, patch_size, out_channels):
    w1, b1 = prepared["w1"], prepared["b1"]
    O = prepared["out_dim"]

    # Conditioning branch (tiny, stays in JAX): emb = Linear1(SiLU(temb)).
    emb = jax.nn.silu(temb.astype(jnp.float32)) @ w1.astype(jnp.float32) \
        + b1.astype(jnp.float32)                               # (B, D)
    scale = emb[:, None, :]                                    # (B, 1, D) f32

    # Pallas hot path: LayerNorm * (1 + scale) followed by Linear2.
    proj = final_norm_proj(hidden_states, scale,
                           prepared["w2p"], prepared["b2p"])   # (B, S, OP) bf16

    p = patch_size
    outs = []
    for i, ((height, width), img_len, seq_len) in enumerate(
            zip(img_sizes, l_effective_img_len, seq_lengths)):
        # Fused gather: token window AND the :O un-pad slice in one indexing op.
        toks = proj[i, seq_len - img_len:seq_len, :O]          # (img_len, p*p*C)
        outs.append(unpatchify_one(toks, height // p, width // p, p, out_channels))
    return jnp.stack(outs, axis=0)                             # (B, C, H, W) bf16


def reference_forward(hidden_states, temb, params, img_sizes,
                      l_effective_img_len, seq_lengths, patch_size, out_channels):
    """Pure-JAX f32 reference of the same math, for a correctness check."""
    w1, b1, w2, b2 = params["w1"], params["b1"], params["w2"], params["b2"]
    emb = jax.nn.silu(temb.astype(jnp.float32)) @ w1 + b1
    x = hidden_states.astype(jnp.float32)
    mean = jnp.mean(x, axis=-1, keepdims=True)
    var = jnp.mean((x - mean) ** 2, axis=-1, keepdims=True)
    xn = (x - mean) * jax.lax.rsqrt(var + LN_EPS)
    y = xn * (1.0 + emb)[:, None, :]
    proj = y @ w2 + b2
    p = patch_size
    outs = []
    for i, ((height, width), img_len, seq_len) in enumerate(
            zip(img_sizes, l_effective_img_len, seq_lengths)):
        toks = proj[i, seq_len - img_len:seq_len]
        outs.append(unpatchify_one(toks, height // p, width // p, p, out_channels))
    return jnp.stack(outs, axis=0)


if __name__ == "__main__":
    # Small, deterministic synthetic configuration.
    B = 2              # batch
    D = 32             # hidden size
    Dc = 32            # conditioning (temb) dim
    p = 2              # patch size
    C = 4              # output (latent) channels
    H = W = 8          # image size -> h = w = 4, img_len = 16
    img_len = (H // p) * (W // p)      # 16
    S = 24             # padded sequence length (exercises the ragged S-tile path)
    O = p * p * C      # 16, Linear2 output dim

    img_sizes = [(H, W)] * B
    l_effective_img_len = [img_len] * B
    seq_lengths = [S] * B

    key = jax.random.PRNGKey(0)
    k1, k2, k3, k4, k5, k6 = jax.random.split(key, 6)
    params = {
        "w1": jax.random.normal(k1, (Dc, D), jnp.float32) * 0.05,
        "b1": jax.random.normal(k2, (D,), jnp.float32) * 0.05,
        "w2": jax.random.normal(k3, (D, O), jnp.float32) * 0.05,
        "b2": jax.random.normal(k4, (O,), jnp.float32) * 0.05,
    }
    # Activations arrive in bf16 (the module runs under autocast).
    hidden_states = jax.random.normal(k5, (B, S, D), jnp.float32).astype(jnp.bfloat16)
    temb = jax.random.normal(k6, (B, Dc), jnp.float32)

    prepared = prepare_final_layer_params(params)   # one-time weight prep

    out = final_layer_forward(hidden_states, temb, prepared, img_sizes,
                              l_effective_img_len, seq_lengths, p, C)
    out = jax.block_until_ready(out)

    ref = reference_forward(hidden_states, temb, params, img_sizes,
                            l_effective_img_len, seq_lengths, p, C)
    assert out.shape == (B, C, H, W), out.shape
    # bf16 MXU matmul + bf16 modulation + bf16 output vs. an f32 reference.
    err = float(jnp.max(jnp.abs(out.astype(jnp.float32) - ref)))
    assert err < 3e-2, err

    print("KERNEL_OK")
</pallas_src>

<mosaic_0001>
module attributes {stable_mosaic.version = 11 : i64} {
  func.func @_final_norm_proj_kernel(%arg0: i32, %arg1: i32, %arg2: memref<1x32x32xbf16, #tpu.memory_space<vmem>>, %arg3: memref<1x1x32xf32, #tpu.memory_space<vmem>>, %arg4: memref<32x128xbf16, #tpu.memory_space<vmem>>, %arg5: memref<1x128xf32, #tpu.memory_space<vmem>>, %arg6: memref<1x32x128xbf16, #tpu.memory_space<vmem>>) attributes {dimension_semantics = [#tpu.dimension_semantics<parallel>, #tpu.dimension_semantics<parallel>], iteration_bounds = array<i64: 2, 1>, scalar_prefetch = 0 : i64, scratch_operands = 0 : i64, tpu.core_type = #tpu.core_type<tc>, window_params = [{transform_indices = @transform_0, window_bounds = array<i64: 1, 32, 32>}, {transform_indices = @transform_1, window_bounds = array<i64: 1, 1, 32>}, {pipeline_mode = #tpu.pipeline_mode<synchronous>, transform_indices = @transform_2, window_bounds = array<i64: 32, 128>}, {pipeline_mode = #tpu.pipeline_mode<synchronous>, transform_indices = @transform_3, window_bounds = array<i64: 1, 128>}, {transform_indices = @transform_4, window_bounds = array<i64: 1, 32, 128>}]} {
    %c0 = arith.constant 0 : index
    %c0_0 = arith.constant 0 : index
    %c0_1 = arith.constant 0 : index
    %0 = vector.load %arg2[%c0, %c0_0, %c0_1] : memref<1x32x32xbf16, #tpu.memory_space<vmem>>, vector<1x32x32xbf16>
    %1 = vector.shape_cast %0 : vector<1x32x32xbf16> to vector<32x32xbf16>
    %2 = arith.extf %1 : vector<32x32xbf16> to vector<32x32xf32>
    %cst = arith.constant dense<0.000000e+00> : vector<32xf32>
    %3 = vector.multi_reduction <add>, %2, %cst [1] : vector<32x32xf32> to vector<32xf32>
    %4 = vector.shape_cast %3 : vector<32xf32> to vector<32x1xf32>
    %cst_2 = arith.constant 3.125000e-02 : f32
    %5 = vector.broadcast %cst_2 : f32 to vector<32x1xf32>
    %6 = arith.mulf %4, %5 : vector<32x1xf32>
    %7 = vector.broadcast %6 : vector<32x1xf32> to vector<32x32xf32>
    %8 = arith.subf %2, %7 : vector<32x32xf32>
    %9 = arith.mulf %8, %8 : vector<32x32xf32>
    %cst_3 = arith.constant dense<0.000000e+00> : vector<32xf32>
    %10 = vector.multi_reduction <add>, %9, %cst_3 [1] : vector<32x32xf32> to vector<32xf32>
    %11 = vector.shape_cast %10 : vector<32xf32> to vector<32x1xf32>
    %cst_4 = arith.constant 3.125000e-02 : f32
    %12 = vector.broadcast %cst_4 : f32 to vector<32x1xf32>
    %13 = arith.mulf %11, %12 : vector<32x1xf32>
    %cst_5 = arith.constant 9.99999997E-7 : f32
    %14 = vector.broadcast %cst_5 : f32 to vector<32x1xf32>
    %15 = arith.addf %13, %14 : vector<32x1xf32>
    %16 = math.rsqrt %15 : vector<32x1xf32>
    %c0_6 = arith.constant 0 : index
    %c0_7 = arith.constant 0 : index
    %c0_8 = arith.constant 0 : index
    %17 = vector.load %arg3[%c0_6, %c0_7, %c0_8] : memref<1x1x32xf32, #tpu.memory_space<vmem>>, vector<1x1x32xf32>
    %18 = vector.shape_cast %17 : vector<1x1x32xf32> to vector<1x32xf32>
    %cst_9 = arith.constant 1.000000e+00 : f32
    %19 = vector.broadcast %cst_9 : f32 to vector<1x32xf32>
    %20 = arith.addf %19, %18 : vector<1x32xf32>
    %21 = arith.truncf %20 : vector<1x32xf32> to vector<1x32xbf16>
    %22 = vector.broadcast %16 : vector<32x1xf32> to vector<32x32xf32>
    %23 = arith.mulf %8, %22 : vector<32x32xf32>
    %24 = arith.truncf %23 : vector<32x32xf32> to vector<32x32xbf16>
    %25 = vector.broadcast %21 : vector<1x32xbf16> to vector<32x32xbf16>
    %26 = arith.mulf %24, %25 : vector<32x32xbf16>
    %c0_10 = arith.constant 0 : index
    %c0_11 = arith.constant 0 : index
    %27 = vector.load %arg4[%c0_10, %c0_11] : memref<32x128xbf16, #tpu.memory_space<vmem>>, vector<32x128xbf16>
    %cst_12 = arith.constant dense<0.000000e+00> : vector<32x128xf32>
    %28 = tpu.matmul %26, %27, %cst_12 {dimension_numbers = #tpu.dot_dimension_numbers<[1], [0], [0], [1], [0, 0, 1, 1], [], []>} : vector<32x32xbf16>, vector<32x128xbf16>, vector<32x128xf32> -> vector<32x128xf32>
    %c0_13 = arith.constant 0 : index
    %c0_14 = arith.constant 0 : index
    %29 = vector.load %arg5[%c0_13, %c0_14] : memref<1x128xf32, #tpu.memory_space<vmem>>, vector<1x128xf32>
    %30 = vector.broadcast %29 : vector<1x128xf32> to vector<32x128xf32>
    %31 = arith.addf %28, %30 : vector<32x128xf32>
    %32 = arith.truncf %31 : vector<32x128xf32> to vector<32x128xbf16>
    %c0_15 = arith.constant 0 : index
    %c0_16 = arith.constant 0 : index
    %c0_17 = arith.constant 0 : index
    %33 = vector.load %arg6[%c0_15, %c0_16, %c0_17] : memref<1x32x128xbf16, #tpu.memory_space<vmem>>, vector<1x32x128xbf16>
    %34 = vector.shape_cast %33 : vector<1x32x128xbf16> to vector<32x128xbf16>
    %35 = vector.shape_cast %32 : vector<32x128xbf16> to vector<1x32x128xbf16>
    tpu.vector_store %arg6[%c0_15, %c0_16, %c0_17], %35 {strides = array<i32>} : memref<1x32x128xbf16, #tpu.memory_space<vmem>>, vector<1x32x128xbf16>,
    return
  }
  func.func @transform_0(%arg0: i32, %arg1: i32) -> (i32, i32, i32) {
    %c0_i32 = arith.constant 0 : i32
    %c0_i32_0 = arith.constant 0 : i32
    return %arg0, %arg1, %c0_i32 : i32, i32, i32
  }
  func.func @transform_1(%arg0: i32, %arg1: i32) -> (i32, i32, i32) {
    %c0_i32 = arith.constant 0 : i32
    %c0_i32_0 = arith.constant 0 : i32
    %c0_i32_1 = arith.constant 0 : i32
    return %arg0, %c0_i32, %c0_i32_0 : i32, i32, i32
  }
  func.func @transform_2(%arg0: i32, %arg1: i32) -> (i32, i32) {
    %c0_i32 = arith.constant 0 : i32
    %c0_i32_0 = arith.constant 0 : i32
    %c0_i32_1 = arith.constant 0 : i32
    return %c0_i32, %c0_i32_0 : i32, i32
  }
  func.func @transform_3(%arg0: i32, %arg1: i32) -> (i32, i32) {
    %c0_i32 = arith.constant 0 : i32
    %c0_i32_0 = arith.constant 0 : i32
    %c0_i32_1 = arith.constant 0 : i32
    return %c0_i32, %c0_i32_0 : i32, i32
  }
  func.func @transform_4(%arg0: i32, %arg1: i32) -> (i32, i32, i32) {
    %c0_i32 = arith.constant 0 : i32
    %c0_i32_0 = arith.constant 0 : i32
    return %arg0, %arg1, %c0_i32 : i32, i32, i32
  }
}

</mosaic_0001>

<bundles_post_ra>
// kernel: tpu_custom_call.1
= control target key start
LH: loop header
LB: loop body
LE: loop exit
PB: predicated region body
PF: predicated region fallthrough
CT: control target
= control target key end

     0   :  { %s1094_s0 = inlined_call_operand.hbm [shape: bf16[2,24,32], index: 0, kind: input, shape index: {}]   ;;  %s1095_s1 = inlined_call_operand.vmem [shape: f32[2,1,32], index: 1, kind: input, shape index: {}]   ;;  %s1096_s2 = inlined_call_operand.hbm [shape: bf16[32,128], index: 2, kind: input, shape index: {}]   ;;  %s1097_s3 = inlined_call_operand.vmem [shape: f32[1,128], index: 3, kind: input, shape index: {}]   ;;  %s1098_s4 = inlined_call_operand.hbm [shape: bf16[2,24,128], index: 4, kind: output, shape index: {}]  }
   0x1   :  { %1103 = sst [smem:[#allocation11_spill]] %s1096_s2 }
   0x2   :  { %9 = vsyncpa [#allocation3], 0 }
   0x3   :  { %11 = vsyncpa [#allocation3 + $0x1], 0 }
   0x4   :  { %12 = vsyncpa [#allocation6], 0 }
   0x5   :  { %13 = vsyncpa [#allocation4], 0 }
   0x6   :  { %15 = vsyncpa [#allocation4 + $0x1], 0  ;;  %s887_s15 = smov 0   ;;  %s889_s16 = smov 0  }
   0x7   :  { %s891_s17 = smov 0   ;;  %s893_s18 = smov 0  }
   0x8   :  { %s895_s19 = smov 0   ;;  %s897_s20 = smov 0  }
   0x9 LB: > { %s573_s21 = sadd.s32 4294967295, %s851_s20   ;;  %s574_s22 = sadd.s32 4294967294, %s851_s20   ;;  %s851_s20 = sphi %s897_s20, %s21_s20   ;;  %s847_s19 = sphi %s895_s19, %s1122_s19   ;;  %s843_s18 = sphi %s893_s18, %s1121_s18   ;;  %s839_s17 = sphi %s891_s17, %s1120_s17   ;;  %s835_s16 = sphi %s889_s16, %s1119_s16   ;;  %s831_s15 = sphi %s887_s15, %s1118_s15  }
   0xa   : > { %s33_s23 = sadd.s32 1, %s847_s19  ;;  %s42_s24 = sadd.s32 1, %s839_s17 }
   0xb   : > { %p35_p0 = scmp.ge.s32.totalorder %s33_s23, 2  ;;  %p49_p1 = scmp.ne.s32.totalorder %s839_s17, %s835_s16 }
   0xc   : > { %p50_p2 = scmp.eq.s32.totalorder %s851_s20, 0  ;;  %p55_p3 = scmp.ne.s32.totalorder %s835_s16, %s831_s15 }
   0xd   : > { %s1124_s23 = smov (%p35_p0, %s33_s23), 0  ;;  %p932_p5 = scmp.eq.s32.totalorder %s573_s21, 0 }
   0xe   : > { %p928_p4 = por %p50_p2, %p49_p1  ;;  %s37_s27 = ssub.s32 %s847_s19, %s1124_s23 }
   0xf   : > { %s1105_s26 = scalar_select %p932_p5, 1, 0 }
  0x10   : > { %s1104_s25 = scalar_select %p928_p4, 1, 0 }
  0x11   : > { %p149_p6 = scmp.eq.s32.totalorder %s573_s21, 1  ;;  %p40_p7 = scmp.eq.s32.totalorder %s37_s27, 0 }
  0x12   : > { %p940_p8 = por %p932_p5, %p55_p3  ;;  %p155_p10 = scmp.eq.s32.totalorder %s574_s22, 1 }
  0x13   : > { %p944_p9 = por %p149_p6, %p49_p1  ;;  %p575_p12 = scmp.ge.s32.totalorder %s851_s20, 1 }
  0x14   : > { %s1106_s28 = scalar_select %p940_p8, 1, 0 }
  0x15   : > { %s1107_s29 = scalar_select %p944_p9, 1, 0 }
  0x16   : > { %s949_s30 = scalar_select %p40_p7, %s839_s17, %s42_s24  }
  0x17   : > { %p951_p11 = por %p155_p10, %p55_p3  ;;  %p162_p13 = scmp.lt.s32.totalorder %s851_s20, 3 }
  0x18   : > { %s853_s7 = smov [#allocation5]   ;;  %s1111_s2 = sld [smem:[#allocation11_spill]] }
  0x19   : > { %s1108_s5 = scalar_select %p951_p11, 1, 0 }
  0x1a   : > { %p957_p0 = pnand %p575_p12, %p162_p13  ;;  %s174_s8 = sshll.u32 %s853_s7, 4  ;;  %s175_s8 = int_to_ptr.vmem [resolvable:$true] %s174_s8 }
  0x1c   : > { %s1109_s6 = scalar_select %p957_p0, 1, 0 }
  0x1d   : > { %p641_p1 = pneg %p957_p0 }
  0x1e   : > { %s717_s12 = scalar_lea.hbm %s1111_s2, 256 }
  0x1f   : > { %p965_p2 = pnand %p641_p1, %p932_p5  ;;  %p718_p3 = scmp.ne.s32.totalorder %s1111_s2, %s717_s12 }
  0x20   : > { %p724_p12 = scmp.lt.u32.totalorder %s717_s12, %s1111_s2 }
  0x21   : > { %p719_p6 = pneg %p965_p2 }
  0x23   : > { %p720_p7 = pnand %p719_p6, %p718_p3 }
  0x25   : > { %p721_p10 = pneg %p720_p7 }
  0x27   : > { %p726_p13 = pnand %p724_p12, %p721_p10 }
  0x29   : > { %729 = shalt.err (!%p726_p13)
}
  0x2a   : > { %s730_s24 = scalar_lea.vmem %s175_s8, 256  ;;  %p738_p5 = scmp.lt.s32.totalorder %s175_s8, %s175_s8 }
  0x2b   : > { %p731_p1 = scmp.ne.s32.totalorder %s175_s8, %s730_s24  ;;  %p739_p8 = scmp.lt.s32.totalorder %s730_s24, %s730_s24 }
  0x2d   : > { %p733_p11 = pnand %p731_p1, %p719_p6  ;;  %p740_p0 = por %p739_p8, %p738_p5 }
  0x2f   : > { %p734_p9 = pneg %p733_p11 }
  0x31   : > { %p741_p4 = pnand %p740_p0, %p734_p9 }
  0x33   : > { %744 = shalt.err (!%p741_p4)
}
  0x34   : > { %s854_s27 = smov 64   ;;  %s855_s7 = smov 4  }
  0x35   : > { %644 = dma.hbm_to_vmem [thread:$0]  (!%p965_p2), %s1111_s2, 256, %s175_s8, [#allocation6], %s854_s27, %s854_s27, %s855_s7  }
  0x36   : > { %p577_p3 = scmp.ge.s32.totalorder %s851_s20, 2 }
  0x37   : > { %p1112_p11 = scmp.ne.s32.totalorder (!%p577_p3), %s1104_s25, 0 }
  0x38   : > { %187 = sbr.rel (%p577_p3) target bundleno = 95 (0x5f), region = 24 }
  0x3f   : > { %190 = sbr.rel (!%p1112_p11) target bundleno = 95 (0x5f), region = 28  ;;  %s191_s12 = sand.u32 (%p1112_p11), 1, %s839_s17  }
  0x40   : > { %s578_s13 = sshll.u32 (%p1112_p11), %s191_s12, 4  ;;  %s991_s14 = scalar_lea.sflag (%p1112_p11), [#allocation3], %s191_s12 }
  0x41   : > { %s195_s21 = scalar_lea.vmem (%p1112_p11), [#allocation2], %s578_s13 }
  0x46   : > { %201 = vsyncadd %s991_s14, 64  ;;  %s633_s9 = smul.u32 192, %s847_s19  ;;  %s208_s22 = sshll.u32 %s195_s21, 4  ;;  %s995_s22 = int_to_ptr.vmem [resolvable:$true] %s208_s22 }
  0x47   : > { %s747_s11 = scalar_lea.hbm %s1094_s0, 384 }
  0x48   : > { %s206_s27 = scalar_lea.hbm %s1094_s0, %s633_s9 }
  0x49   : > { %s745_s7 = scalar_lea.hbm %s206_s27, 192  ;;  %p748_p5 = scmp.lt.u32.totalorder %s206_s27, %s1094_s0 }
  0x4a   : > { %p746_p4 = scmp.ne.s32.totalorder %s206_s27, %s745_s7  ;;  %p749_p8 = scmp.lt.u32.totalorder %s747_s11, %s745_s7 }
  0x4b   : > { %p751_p0 = scmp.lt.u32.totalorder %s745_s7, %s206_s27 }
  0x4c   : > { %p750_p9 = por %p749_p8, %p748_p5 }
  0x4e   : > { %p752_p2 = por %p751_p0, %p750_p9 }
  0x50   : > { %p753_p6 = pnand %p752_p2, %p746_p4 }
  0x52   : > { %756 = shalt.err (!%p753_p6)
}
  0x53   : > { %s757_s13 = scalar_lea.vmem %s995_s22, 192  ;;  %s856_s21 = smov [#allocation2]  }
  0x54   : > { %p758_p7 = scmp.ne.s32.totalorder %s995_s22, %s757_s13  ;;  %s759_s9 = sshll.u32 %s856_s21, 4  ;;  %s760_s9 = int_to_ptr.vmem [resolvable:$false] %s759_s9 }
  0x55   : > { %s761_s8 = scalar_lea.vmem %s760_s9, 512  ;;  %p762_p10 = scmp.lt.s32.totalorder %s995_s22, %s760_s9 }
  0x56   : > { %p763_p12 = scmp.lt.s32.totalorder %s761_s8, %s757_s13 }
  0x58   : > { %p764_p13 = por %p763_p12, %p762_p10 }
  0x5a   : > { %p765_p1 = pnand %p764_p13, %p758_p7 }
  0x5c   : > { %768 = shalt.err (!%p765_p1)
}
  0x5d   : > { %s857_s2 = smov 64   ;;  %s858_s24 = smov 4  }
  0x5e   : > { %214 = dma.hbm_to_vmem [thread:$0]  %s206_s27, 192, %s995_s22, %s991_s14, %s857_s2, %s857_s2, %s858_s24  }
  0x5f PF: > { %p1113_p11 = scmp.ne.s32.totalorder %s1109_s6, 0 }
  0x60   : > { %s1014_s7 = sand.u32 (!%p1113_p11), 1, %s835_s16   ;;  %p1114_p4 = scmp.ne.s32.totalorder (!%p1113_p11), %s1106_s28, 0 }
  0x61   : > { %226 = sbr.rel (%p1113_p11) target bundleno = 677 (0x2a5), region = 36  ;;  %s581_s25 = sshll.u32 (!%p1113_p11), %s1014_s7, 4 }
  0x62   : > { %s229_s10 = scalar_lea.sflag (!%p1113_p11), [#allocation3], %s1014_s7  ;;  %s232_s11 = scalar_lea.vmem (!%p1113_p11), [#allocation2], %s581_s25 }
  0x68   : > { %818 = dma.done.wait (%p1114_p4), %s229_s10, 256  }
  0x69   : > { %820 = vsyncadd (%p1114_p4), %s229_s10, 4294967040  ;;  %p1115_p5 = scmp.ne.s32.totalorder %s1105_s26, 0 }
  0x6b   : > { %822 = dma.done.wait (%p1115_p5), [#allocation6], 256  }
  0x6c   : > { %824 = vsyncadd (%p1115_p5), [#allocation6], 4294967040  ;;  %v602_v0 = vld [vmem:[%s232_s11] sm:$0xff]   ;;  %vm282_vm0 = vcmask 261120   ;;  %v619_v1 = vld [vmem:[%s232_s11 + $0x8] sm:$0xff]   ;;  %p267_p8 = scmp.lt.s32.totalorder %s843_s18, 1  ;;  %v343_v44 = vlaneseq }
  0x6d   : > { %v603_v2 = vunpack.c.l.bf16 %v602_v0  ;;  %v607_v3 = vunpack.c.l.bf16 %v619_v1  ;;  %v604_v4 = vunpack.c.h.bf16 %v602_v0  ;;  %v608_v5 = vunpack.c.h.bf16 %v619_v1  ;;  %v707_v30 = vld [vmem:[#allocation5] sm:$0xff]   ;;  %v708_v31 = vld [vmem:[#allocation5 + $0x8] sm:$0xff]   ;;  %s263_s12 = scalar_lea.vmem [#allocation7], %s581_s25  ;;  %s448_s13 = scalar_lea.sflag [#allocation4], %s1014_s7 }
  0x6e   : > { %625 = vmatprep.subr.bf16.mxu0 %v707_v30  ;;  %s268_s26 = scalar_select %p267_p8, %s843_s18, 1  ;;  %v344_v48 = vshrl.u32 %v343_v44, 7  ;;  %v584_v1 = vld [vmem:[%s1097_s3] ss:$0 sm:$0xff] }
  0x6f   : > { %v283_v6 = vsel %vm282_vm0, %v603_v2, 0.0  ;;  %v289_v7 = vsel %vm282_vm0, %v607_v3, 0.0  ;;  %v286_v8 = vsel %vm282_vm0, %v604_v4, 0.0  ;;  %v292_v9 = vsel %vm282_vm0, %v608_v5, 0.0  ;;  %626 = vmatpush3.bf16.msra.mxu0 %v707_v30  ;;  %p1116_p9 = scmp.ne.s32.totalorder %s1107_s29, 0 }
  0x70   : > { %284 = vadd.xlane.f32.xlu0 %v283_v6  ;;  %290 = vadd.xlane.f32.xlu1 %v289_v7  ;;  %s269_s14 = scalar_lea.vmem %s1095_s1, %s268_s26  ;;  %v345_v50 = vsub.s32 0, %v344_v48 }
  0x71   : > { %627 = vmatprep.subr.bf16.mxu0 %v708_v31  ;;  %v331_v39 = vld [vmem:[%s269_s14] sm:$0x1] }
  0x72   : > { %v332_v43 = vadd.f32 1.0, %v331_v39 }
  0x73   : > { %628 = vmatpush3.bf16.msra.mxu0 %v708_v31 }
  0x74   : > { %287 = vadd.xlane.f32.xlu0 %v286_v8  ;;  %293 = vadd.xlane.f32.xlu1 %v292_v9  ;;  %v333_v47 = vpack.c.bf16 %v332_v43, %v332_v43 }
  0x76   : > { %v341_v49 = vpack.i.b16 %v333_v47, %v333_v47 }
  0x78   : > { %v346_v55 = vrot.slane %v341_v49, %v345_v50 }
  0xfd   : > { %v285_v10 = vpop.xlane.xlu0 %284  ;;  %v291_v11 = vpop.xlane.xlu1 %290 }
  0xfe   : > { %v295_v12 = vmul.f32 0.03125, %v285_v10  ;;  %v297_v13 = vmul.f32 0.03125, %v291_v11 }
 0x100   : > { %v299_v14 = vsub.f32 %v603_v2, %v295_v12  ;;  %v301_v15 = vsub.f32 %v607_v3, %v297_v13 }
 0x101   : > { %v288_v16 = vpop.xlane.xlu0 %287  ;;  %v294_v17 = vpop.xlane.xlu1 %293 }
 0x102   : > { %v296_v18 = vmul.f32 0.03125, %v288_v16  ;;  %v298_v19 = vmul.f32 0.03125, %v294_v17  ;;  %v303_v20 = vmul.f32 %v299_v14, %v299_v14  ;;  %v305_v21 = vmul.f32 %v301_v15, %v301_v15 }
 0x104   : > { %v300_v22 = vsub.f32 %v604_v4, %v296_v18  ;;  %v302_v23 = vsub.f32 %v608_v5, %v298_v19  ;;  %v307_v24 = vsel %vm282_vm0, %v303_v20, 0.0  ;;  %v313_v25 = vsel %vm282_vm0, %v305_v21, 0.0 }
 0x105   : > { %308 = vadd.xlane.f32.xlu0 %v307_v24 }
 0x106   : > { %v304_v26 = vmul.f32 %v300_v22, %v300_v22  ;;  %v306_v27 = vmul.f32 %v302_v23, %v302_v23 }
 0x108   : > { %v310_v28 = vsel %vm282_vm0, %v304_v26, 0.0  ;;  %v316_v29 = vsel %vm282_vm0, %v306_v27, 0.0 }
 0x109   : > { %314 = vadd.xlane.f32.xlu0 %v313_v25  ;;  %311 = vadd.xlane.f32.xlu1 %v310_v28 }
 0x10d   : > { %317 = vadd.xlane.f32.xlu1 %v316_v29 }
 0x192   : > { %v309_v32 = vpop.xlane.xlu0 %308 }
 0x193   : > { %v319_v33 = vmul.f32 0.03125, %v309_v32 }
 0x195   : > { %v323_v34 = vadd.f32 1e-06, %v319_v33 }
 0x196   : > { %v312_v35 = vpop.xlane.xlu1 %311  ;;  %v315_v36 = vpop.xlane.xlu0 %314 }
 0x197   : > { %v320_v37 = vmul.f32 0.03125, %v312_v35  ;;  %v321_v38 = vmul.f32 0.03125, %v315_v36  ;;  %709 = vrsqrt.f32 %v323_v34 }
 0x199   : > { %v324_v40 = vadd.f32 1e-06, %v320_v37  ;;  %v325_v41 = vadd.f32 1e-06, %v321_v38 }
 0x19a   : > { %v318_v42 = vpop.xlane.xlu1 %317 }
 0x19b   : > { %711 = vrsqrt.f32 %v324_v40  ;;  %v322_v45 = vmul.f32 0.03125, %v318_v42 }
 0x19c   : > { %713 = vrsqrt.f32 %v325_v41 }
 0x19d   : > { %v326_v46 = vadd.f32 1e-06, %v322_v45 }
 0x19f   : > { %715 = vrsqrt.f32 %v326_v46 }
 0x1a1   : > { %v710_v51 = vpop.eup %709 }
 0x1a2   : > { %v334_v53 = vmul.f32 %v710_v51, %v299_v14 }
 0x1a5   : > { %v712_v52 = vpop.eup %711 }
 0x1a6   : > { %v335_v54 = vmul.f32 %v712_v52, %v300_v22  ;;  %v714_v56 = vpop.eup %713 }
 0x1a7   : > { %v336_v59 = vmul.f32 %v714_v56, %v301_v15 }
 0x1a8   : > { %v338_v57 = vpack.c.bf16 %v335_v54, %v334_v53 }
 0x1a9   : > { %v716_v58 = vpop.eup %715 }
 0x1aa   : > { %v337_v60 = vmul.f32 %v716_v58, %v302_v23  ;;  %v347_v61 = vmul.bf16 %v346_v55, %v338_v57 }
 0x1ac   : > { %v339_v62 = vpack.c.bf16 %v337_v60, %v336_v59  ;;  %629 = vmatprep.mubr.msk.bf16.mxu0 %vm282_vm0, %v347_v61 }
 0x1ae   : > { %v348_v63 = vmul.bf16 %v346_v55, %v339_v62 }
 0x1b0   : > { %630 = vmatmul.mubr.msk.bf16.vlgmr.msra.gmra.mrb[0].mxu0 %vm282_vm0, %v348_v63 }
 0x283   : > { %v631_v0 = vpop.f32.mrb[0].mxu0 }
 0x284   : > { %v412_v2 = vpop.f32.mrb[1].mxu0  ;;  %v421_v4 = vadd.f32 %v631_v0, %v584_v1 }
 0x285   : > { %v632_v3 = vpop.f32.mrb[2].mxu0  ;;  %v413_v7 = vadd.f32 %v584_v1, %v412_v2  ;;  %454 = sbr.rel (!%p1116_p9) target bundleno = 677 (0x2a5), region = 48 }
 0x286   : > { %v424_v5 = vadd.f32 %v632_v3, %v584_v1  ;;  %v415_v6 = vpop.f32.mrb[3].mxu0 }
 0x287   : > { %v416_v8 = vadd.f32 %v584_v1, %v415_v6 }
 0x288   : > { %v617_v9 = vpack.c.bf16 %v424_v5, %v421_v4 }
 0x289   : > { %v612_v10 = vpack.c.bf16 %v416_v8, %v413_v7 }
 0x28a   : > { %620 = vst [vmem:[%s263_s12 + $0x8] sm:$0xff] %v617_v9  }
 0x28b   : > { %613 = vst [vmem:[%s263_s12] sm:$0xff] %v612_v10  }
 0x28c   : > { %460 = vsyncadd %s448_s13, 64  ;;  %s634_s21 = smul.u32 192, %s843_s18  ;;  %s467_s9 = sshll.u32 %s263_s12, 4  ;;  %s1054_s9 = int_to_ptr.vmem [resolvable:$true] %s467_s9 }
 0x28d   : > { %s769_s25 = scalar_lea.vmem %s1054_s9, 192  ;;  %s859_s10 = smov [#allocation7]  }
 0x28e   : > { %s465_s24 = scalar_lea.hbm %s1098_s4, %s634_s21  ;;  %p770_p0 = scmp.ne.s32.totalorder %s1054_s9, %s769_s25 }
 0x28f   : > { %s771_s29 = sshll.u32 %s859_s10, 4  ;;  %s772_s29 = int_to_ptr.vmem [resolvable:$false] %s771_s29 }
 0x290   : > { %s773_s11 = scalar_lea.vmem %s772_s29, 512  ;;  %p774_p2 = scmp.lt.s32.totalorder %s1054_s9, %s772_s29 }
 0x291   : > { %p775_p6 = scmp.lt.s32.totalorder %s773_s11, %s769_s25 }
 0x293   : > { %p776_p7 = por %p775_p6, %p774_p2 }
 0x295   : > { %p777_p10 = pnand %p776_p7, %p770_p0 }
 0x297   : > { %780 = shalt.err (!%p777_p10)
}
 0x298   : > { %s781_s18 = scalar_lea.hbm %s465_s24, 192  ;;  %s783_s6 = scalar_lea.hbm %s1098_s4, 384 }
 0x299   : > { %p782_p12 = scmp.ne.s32.totalorder %s465_s24, %s781_s18  ;;  %p784_p13 = scmp.lt.u32.totalorder %s465_s24, %s1098_s4 }
 0x29a   : > { %p785_p1 = scmp.lt.u32.totalorder %s783_s6, %s781_s18  ;;  %p787_p4 = scmp.lt.u32.totalorder %s781_s18, %s465_s24 }
 0x29c   : > { %p786_p11 = por %p785_p1, %p784_p13 }
 0x29e   : > { %p788_p5 = por %p787_p4, %p786_p11 }
 0x2a0   : > { %p789_p8 = pnand %p788_p5, %p782_p12 }
 0x2a2   : > { %792 = shalt.err (!%p789_p8)
}
 0x2a3   : > { %s860_s27 = smov 64   ;;  %s861_s12 = smov 4  }
 0x2a4   : > { %473 = dma.vmem_to_hbm [thread:$0]  %s1054_s9, 192, %s465_s24, %s448_s13, %s860_s27, %s860_s27, %s861_s12  }
 0x2a5 PF: > { %s482_s21 = sand.u32 1, %s831_s15   ;;  %p1117_p9 = scmp.ne.s32.totalorder %s1108_s5, 0 }
 0x2a6   : > { %s483_s8 = scalar_lea.sflag [#allocation4], %s482_s21 }
 0x2a7   : > { %p646_p0 = pnand %p577_p3, %p1117_p9 }
 0x2a9   : > { %826 = dma.done.wait (!%p646_p0), %s483_s8, 256  }
 0x2aa   : > { %828 = vsyncadd (!%p646_p0), %s483_s8, 4294967040  ;;  %s21_s20 = sadd.s32 1, %s851_s20   ;;  %s1118_s15 = smov %s835_s16 }
 0x2ab   : > { %p18_p2 = scmp.ge.s32.totalorder %s21_s20, 4   ;;  %s1119_s16 = smov %s839_s17 }
 0x2ac   : > { %s1120_s17 = smov %s949_s30  ;;  %s1121_s18 = smov %s847_s19 }
 0x2ad   : > { %s1122_s19 = smov %s1124_s23  ;;  %20 = sbr.rel (!%p18_p2) target bundleno = 9 (0x9), region = 88 }
 0x2b4   :  { %488 = vsyncpa [#allocation3], 1 }
 0x2b5   :  { %490 = vsyncpa [#allocation3 + $0x1], 1 }
 0x2b6   :  { %491 = vsyncpa [#allocation6], 1 }
 0x2b7   :  { %492 = vsyncpa [#allocation4], 1 }
 0x2b8   :  { %494 = vsyncpa [#allocation4 + $0x1], 1 }

</bundles_post_ra>
